<compile_context>
chip_gen: v5e
topology: v5e:2x2
jax: 0.10.0
libtpu: 0.0.40
codegen_flags: <defaults>
</compile_context>

<pallas_src>
import functools
import math

import jax
import jax.numpy as jnp
from jax.experimental import pallas as pl
from jax.experimental.pallas import tpu as pltpu

STATE_DIM = 16
ACTION_DIM = 4
HIDDEN = 32
BATCH = 8
MAX_ACTION = 2.0
OUT_WIDTH = 128  # lane-dense fused output slab width


def _round8(n):
    return ((n + 7) // 8) * 8


def _policy_kernel(x_ref, p_ref, eps_ref, out_ref, *,
                   state_dim, hidden, action_dim, offs,
                   max_action, get_logprob):
    S, H, A = state_dim, hidden, action_dim

    x = x_ref[...]
    eps = eps_ref[...]

    # Static slices of the packed parameter slab (zero-cost ref views + load).
    w1 = p_ref[offs["w1"]:offs["w1"] + S, :H]
    b1 = p_ref[offs["b1"]:offs["b1"] + 1, :H]
    w2 = p_ref[offs["w2"]:offs["w2"] + H, :H]
    b2 = p_ref[offs["b2"]:offs["b2"] + 1, :H]
    w3m = p_ref[offs["w3_mu"]:offs["w3_mu"] + H, :A]
    b3m = p_ref[offs["b3_mu"]:offs["b3_mu"] + 1, :A]
    w3s = p_ref[offs["w3_ls"]:offs["w3_ls"] + H, :A]
    b3s = p_ref[offs["b3_ls"]:offs["b3_ls"] + 1, :A]

    # MLPNetwork: Linear -> ReLU -> Linear -> ReLU -> Linear(split head)
    h1 = jnp.maximum(
        jnp.dot(x, w1, preferred_element_type=jnp.float32) + b1, 0.0)
    h2 = jnp.maximum(
        jnp.dot(h1, w2, preferred_element_type=jnp.float32) + b2, 0.0)

    mu = jnp.dot(h2, w3m, preferred_element_type=jnp.float32) + b3m
    logstd = jnp.dot(h2, w3s, preferred_element_type=jnp.float32) + b3s
    logstd = jnp.clip(logstd, -20.0, 2.0)
    std = jnp.exp(logstd)

    # rsample from TransformedDistribution(Normal(mu, std), TanhTransform)
    z = mu + std * eps                    # pre-tanh sample (cache_size=1)
    action = jnp.tanh(z) * max_action
    mean = jnp.tanh(mu) * max_action      # deterministic mean action

    # Fused, lane-dense output slab: [action | mean | logprob | zero pad]
    out_ref[...] = jnp.zeros_like(out_ref)
    out_ref[:, 0:A] = action
    out_ref[:, A:2 * A] = mean

    if get_logprob:
        # log_prob(y) = Normal(mu, std).log_prob(z) - log|d tanh(z)/dz|
        #   Normal.log_prob(z) = -0.5*eps^2 - logstd - 0.5*log(2*pi)
        #   log|d tanh/dz|     = 2*(log 2 - z - softplus(-2z))
        base_lp = -0.5 * jnp.square(eps) - logstd - 0.5 * math.log(2.0 * math.pi)
        jac = 2.0 * (math.log(2.0) - z - jnp.logaddexp(0.0, -2.0 * z))
        out_ref[:, 2 * A:2 * A + 1] = jnp.sum(base_lp - jac, axis=-1,
                                              keepdims=True)


def pack_params(params, action_dim=ACTION_DIM):
    """Pack all weights/biases into one lane-padded f32 slab (single DMA).

    Each piece starts on an 8-aligned sublane row; the mu / logstd halves of
    the final head are split once here so the kernel never slices lanes at a
    non-zero offset.
    """
    w1, b1 = params["w1"], params["b1"]
    w2, b2 = params["w2"], params["b2"]
    w3, b3 = params["w3"], params["b3"]          # (H, 2A), (1, 2A)
    S, H = w1.shape
    A = action_dim

    pieces = {
        "w1": w1, "w2": w2,
        "w3_mu": w3[:, :A], "w3_ls": w3[:, A:],
        "b1": b1, "b2": b2,
        "b3_mu": b3[:, :A], "b3_ls": b3[:, A:],
    }
    offs, row = {}, 0
    for name in ("w1", "w2", "w3_mu", "w3_ls", "b1", "b2", "b3_mu", "b3_ls"):
        offs[name] = row
        row += _round8(pieces[name].shape[0])

    cols = max(H, A)
    slab = jnp.zeros((row, cols), jnp.float32)
    for name, arr in pieces.items():
        r = offs[name]
        slab = slab.at[r:r + arr.shape[0], :arr.shape[1]].set(arr)

    meta = dict(state_dim=S, hidden=H, action_dim=A, offsets=offs)
    return slab, meta


def policy_forward(x, packed, eps, max_action=MAX_ACTION, get_logprob=True):
    slab, meta = packed
    B = x.shape[0]
    A = meta["action_dim"]
    assert 2 * A + 1 <= OUT_WIDTH

    kernel = functools.partial(
        _policy_kernel,
        state_dim=meta["state_dim"], hidden=meta["hidden"], action_dim=A,
        offs=meta["offsets"], max_action=float(max_action),
        get_logprob=bool(get_logprob))

    vmem = pl.BlockSpec(memory_space=pltpu.MemorySpace.VMEM)
    out = pl.pallas_call(
        kernel,
        out_shape=jax.ShapeDtypeStruct((B, OUT_WIDTH), jnp.float32),
        in_specs=[vmem, vmem, vmem],
        out_specs=vmem,
    )(x, slab, eps)

    action = out[:, :A]
    mean = out[:, A:2 * A]
    logprob = out[:, 2 * A:2 * A + 1] if get_logprob else None
    return action, logprob, mean


def init_params(key, state_dim=STATE_DIM, action_dim=ACTION_DIM, hidden=HIDDEN):
    """Deterministic init mimicking torch.nn.Linear default U(-1/sqrt(in), 1/sqrt(in))."""
    ks = jax.random.split(key, 6)

    def lin(kw, kb, fan_in, fan_out):
        bound = 1.0 / math.sqrt(fan_in)
        w = jax.random.uniform(kw, (fan_in, fan_out), jnp.float32, -bound, bound)
        b = jax.random.uniform(kb, (1, fan_out), jnp.float32, -bound, bound)
        return w, b

    w1, b1 = lin(ks[0], ks[1], state_dim, hidden)
    w2, b2 = lin(ks[2], ks[3], hidden, hidden)
    w3, b3 = lin(ks[4], ks[5], hidden, 2 * action_dim)
    return dict(w1=w1, b1=b1, w2=w2, b2=b2, w3=w3, b3=b3)


def _reference_forward(x, params, eps, max_action):
    """Pure-JAX reference mirroring the PyTorch forward."""
    A = params["w3"].shape[1] // 2
    h1 = jnp.maximum(x @ params["w1"] + params["b1"], 0.0)
    h2 = jnp.maximum(h1 @ params["w2"] + params["b2"], 0.0)
    mu_logstd = h2 @ params["w3"] + params["b3"]
    mu = mu_logstd[:, :A]
    logstd = jnp.clip(mu_logstd[:, A:], -20.0, 2.0)
    std = jnp.exp(logstd)
    z = mu + std * eps
    base_lp = -0.5 * jnp.square(eps) - logstd - 0.5 * math.log(2.0 * math.pi)
    jac = 2.0 * (math.log(2.0) - z - jnp.logaddexp(0.0, -2.0 * z))
    logp = jnp.sum(base_lp - jac, axis=-1, keepdims=True)
    return jnp.tanh(z) * max_action, logp, jnp.tanh(mu) * max_action


if __name__ == "__main__":
    key = jax.random.PRNGKey(0)
    k_param, k_x, k_eps = jax.random.split(key, 3)

    params = init_params(k_param)
    packed = pack_params(params, ACTION_DIM)
    x = jax.random.normal(k_x, (BATCH, STATE_DIM), jnp.float32)
    eps = jax.random.normal(k_eps, (BATCH, ACTION_DIM), jnp.float32)

    # training-style call (with log-prob)
    action, logprob, mean = policy_forward(x, packed, eps, MAX_ACTION,
                                           get_logprob=True)
    jax.block_until_ready((action, logprob, mean))

    # inference-style call: log-prob block compiled out
    action_nl, logprob_nl, mean_nl = policy_forward(x, packed, eps, MAX_ACTION,
                                                    get_logprob=False)
    jax.block_until_ready((action_nl, mean_nl))

    # sanity check against a pure-JAX reference
    ref_a, ref_lp, ref_m = _reference_forward(x, params, eps, MAX_ACTION)
    assert jnp.allclose(action, ref_a, atol=1e-5), "action mismatch"
    assert jnp.allclose(logprob, ref_lp, atol=1e-4), "logprob mismatch"
    assert jnp.allclose(mean, ref_m, atol=1e-5), "mean mismatch"
    assert logprob_nl is None
    assert jnp.allclose(action_nl, ref_a, atol=1e-5), "action (no-logprob) mismatch"
    assert jnp.allclose(mean_nl, ref_m, atol=1e-5), "mean (no-logprob) mismatch"

    print("KERNEL_OK")
</pallas_src>

<mosaic_0001>
module attributes {stable_mosaic.version = 11 : i64} {
  func.func @_policy_kernel(%arg0: memref<8x16xf32, #tpu.memory_space<vmem>>, %arg1: memref<144x32xf32, #tpu.memory_space<vmem>>, %arg2: memref<8x4xf32, #tpu.memory_space<vmem>>, %arg3: memref<8x128xf32, #tpu.memory_space<vmem>>) attributes {dimension_semantics = [], scalar_prefetch = 0 : i64, scratch_operands = 0 : i64, tpu.core_type = #tpu.core_type<tc>} {
    %c0 = arith.constant 0 : index
    %c0_0 = arith.constant 0 : index
    %0 = vector.load %arg0[%c0, %c0_0] : memref<8x16xf32, #tpu.memory_space<vmem>>, vector<8x16xf32>
    %c0_1 = arith.constant 0 : index
    %c0_2 = arith.constant 0 : index
    %1 = vector.load %arg2[%c0_1, %c0_2] : memref<8x4xf32, #tpu.memory_space<vmem>>, vector<8x4xf32>
    %c0_3 = arith.constant 0 : index
    %c0_4 = arith.constant 0 : index
    %2 = vector.load %arg1[%c0_3, %c0_4] : memref<144x32xf32, #tpu.memory_space<vmem>>, vector<16x32xf32>
    %c112 = arith.constant 112 : index
    %c0_5 = arith.constant 0 : index
    %3 = vector.load %arg1[%c112, %c0_5] : memref<144x32xf32, #tpu.memory_space<vmem>>, vector<1x32xf32>
    %c16 = arith.constant 16 : index
    %c0_6 = arith.constant 0 : index
    %4 = vector.load %arg1[%c16, %c0_6] : memref<144x32xf32, #tpu.memory_space<vmem>>, vector<32x32xf32>
    %c120 = arith.constant 120 : index
    %c0_7 = arith.constant 0 : index
    %5 = vector.load %arg1[%c120, %c0_7] : memref<144x32xf32, #tpu.memory_space<vmem>>, vector<1x32xf32>
    %c48 = arith.constant 48 : index
    %c0_8 = arith.constant 0 : index
    %6 = vector.load %arg1[%c48, %c0_8] : memref<144x32xf32, #tpu.memory_space<vmem>>, vector<32x4xf32>
    %c128 = arith.constant 128 : index
    %c0_9 = arith.constant 0 : index
    %7 = vector.load %arg1[%c128, %c0_9] : memref<144x32xf32, #tpu.memory_space<vmem>>, vector<1x4xf32>
    %c80 = arith.constant 80 : index
    %c0_10 = arith.constant 0 : index
    %8 = vector.load %arg1[%c80, %c0_10] : memref<144x32xf32, #tpu.memory_space<vmem>>, vector<32x4xf32>
    %c136 = arith.constant 136 : index
    %c0_11 = arith.constant 0 : index
    %9 = vector.load %arg1[%c136, %c0_11] : memref<144x32xf32, #tpu.memory_space<vmem>>, vector<1x4xf32>
    %cst = arith.constant dense<0.000000e+00> : vector<8x32xf32>
    %10 = tpu.matmul %0, %2, %cst {dimension_numbers = #tpu.dot_dimension_numbers<[1], [0], [0], [1], [0, 0, 1, 1], [], []>} : vector<8x16xf32>, vector<16x32xf32>, vector<8x32xf32> -> vector<8x32xf32>
    %11 = vector.broadcast %3 : vector<1x32xf32> to vector<8x32xf32>
    %12 = arith.addf %10, %11 : vector<8x32xf32>
    %cst_12 = arith.constant 0.000000e+00 : f32
    %13 = vector.broadcast %cst_12 : f32 to vector<8x32xf32>
    %14 = arith.maximumf %12, %13 : vector<8x32xf32>
    %cst_13 = arith.constant dense<0.000000e+00> : vector<8x32xf32>
    %15 = tpu.matmul %14, %4, %cst_13 {dimension_numbers = #tpu.dot_dimension_numbers<[1], [0], [0], [1], [0, 0, 1, 1], [], []>} : vector<8x32xf32>, vector<32x32xf32>, vector<8x32xf32> -> vector<8x32xf32>
    %16 = vector.broadcast %5 : vector<1x32xf32> to vector<8x32xf32>
    %17 = arith.addf %15, %16 : vector<8x32xf32>
    %cst_14 = arith.constant 0.000000e+00 : f32
    %18 = vector.broadcast %cst_14 : f32 to vector<8x32xf32>
    %19 = arith.maximumf %17, %18 : vector<8x32xf32>
    %cst_15 = arith.constant dense<0.000000e+00> : vector<8x4xf32>
    %20 = tpu.matmul %19, %6, %cst_15 {dimension_numbers = #tpu.dot_dimension_numbers<[1], [0], [0], [1], [0, 0, 1, 1], [], []>} : vector<8x32xf32>, vector<32x4xf32>, vector<8x4xf32> -> vector<8x4xf32>
    %21 = vector.broadcast %7 : vector<1x4xf32> to vector<8x4xf32>
    %22 = arith.addf %20, %21 : vector<8x4xf32>
    %cst_16 = arith.constant dense<0.000000e+00> : vector<8x4xf32>
    %23 = tpu.matmul %19, %8, %cst_16 {dimension_numbers = #tpu.dot_dimension_numbers<[1], [0], [0], [1], [0, 0, 1, 1], [], []>} : vector<8x32xf32>, vector<32x4xf32>, vector<8x4xf32> -> vector<8x4xf32>
    %24 = vector.broadcast %9 : vector<1x4xf32> to vector<8x4xf32>
    %25 = arith.addf %23, %24 : vector<8x4xf32>
    %cst_17 = arith.constant -2.000000e+01 : f32
    %cst_18 = arith.constant 2.000000e+00 : f32
    %26 = vector.broadcast %cst_17 : f32 to vector<8x4xf32>
    %27 = arith.maximumf %26, %25 : vector<8x4xf32>
    %28 = vector.broadcast %cst_18 : f32 to vector<8x4xf32>
    %29 = arith.minimumf %28, %27 : vector<8x4xf32>
    %30 = math.exp %29 : vector<8x4xf32>
    %31 = arith.mulf %30, %1 : vector<8x4xf32>
    %32 = arith.addf %22, %31 : vector<8x4xf32>
    %33 = math.tanh %32 : vector<8x4xf32>
    %cst_19 = arith.constant 2.000000e+00 : f32
    %34 = vector.broadcast %cst_19 : f32 to vector<8x4xf32>
    %35 = arith.mulf %33, %34 : vector<8x4xf32>
    %36 = math.tanh %22 : vector<8x4xf32>
    %cst_20 = arith.constant 2.000000e+00 : f32
    %37 = vector.broadcast %cst_20 : f32 to vector<8x4xf32>
    %38 = arith.mulf %36, %37 : vector<8x4xf32>
    %cst_21 = arith.constant 0.000000e+00 : f32
    %39 = vector.broadcast %cst_21 : f32 to vector<8x128xf32>
    %c0_22 = arith.constant 0 : index
    %c0_23 = arith.constant 0 : index
    %40 = vector.load %arg3[%c0_22, %c0_23] : memref<8x128xf32, #tpu.memory_space<vmem>>, vector<8x128xf32>
    tpu.vector_store %arg3[%c0_22, %c0_23], %39 {strides = array<i32>} : memref<8x128xf32, #tpu.memory_space<vmem>>, vector<8x128xf32>,
    %c0_24 = arith.constant 0 : index
    %c0_25 = arith.constant 0 : index
    %41 = vector.load %arg3[%c0_24, %c0_25] : memref<8x128xf32, #tpu.memory_space<vmem>>, vector<8x4xf32>
    tpu.vector_store %arg3[%c0_24, %c0_25], %35 {strides = array<i32>} : memref<8x128xf32, #tpu.memory_space<vmem>>, vector<8x4xf32>,
    %c0_26 = arith.constant 0 : index
    %c4 = arith.constant 4 : index
    %42 = vector.load %arg3[%c0_26, %c4] : memref<8x128xf32, #tpu.memory_space<vmem>>, vector<8x4xf32>
    tpu.vector_store %arg3[%c0_26, %c4], %38 {strides = array<i32>} : memref<8x128xf32, #tpu.memory_space<vmem>>, vector<8x4xf32>,
    %43 = arith.mulf %1, %1 : vector<8x4xf32>
    %cst_27 = arith.constant -5.000000e-01 : f32
    %44 = vector.broadcast %cst_27 : f32 to vector<8x4xf32>
    %45 = arith.mulf %44, %43 : vector<8x4xf32>
    %46 = arith.subf %45, %29 : vector<8x4xf32>
    %cst_28 = arith.constant 0.918938517 : f32
    %47 = vector.broadcast %cst_28 : f32 to vector<8x4xf32>
    %48 = arith.subf %46, %47 : vector<8x4xf32>
    %cst_29 = arith.constant 0.693147182 : f32
    %49 = vector.broadcast %cst_29 : f32 to vector<8x4xf32>
    %50 = arith.subf %49, %32 : vector<8x4xf32>
    %cst_30 = arith.constant -2.000000e+00 : f32
    %51 = vector.broadcast %cst_30 : f32 to vector<8x4xf32>
    %52 = arith.mulf %51, %32 : vector<8x4xf32>
    %cst_31 = arith.constant 0.000000e+00 : f32
    %53 = vector.broadcast %cst_31 : f32 to vector<8x4xf32>
    %54 = arith.maximumf %53, %52 : vector<8x4xf32>
    %55 = vector.broadcast %cst_31 : f32 to vector<8x4xf32>
    %56 = arith.subf %55, %52 : vector<8x4xf32>
    %57 = arith.cmpf one, %56, %56 : vector<8x4xf32>
    %58 = vector.broadcast %cst_31 : f32 to vector<8x4xf32>
    %59 = arith.addf %58, %52 : vector<8x4xf32>
    %60 = math.absf %56 : vector<8x4xf32>
    %cst_32 = arith.constant 0.000000e+00 : f32
    %61 = vector.broadcast %cst_32 : f32 to vector<8x4xf32>
    %62 = arith.subf %61, %60 : vector<8x4xf32>
    %63 = math.exp %62 : vector<8x4xf32>
    %64 = math.log1p %63 : vector<8x4xf32>
    %65 = arith.addf %54, %64 : vector<8x4xf32>
    %66 = arith.select %57, %59, %65 : vector<8x4xi1>, vector<8x4xf32>
    %67 = arith.subf %50, %66 : vector<8x4xf32>
    %cst_33 = arith.constant 2.000000e+00 : f32
    %68 = vector.broadcast %cst_33 : f32 to vector<8x4xf32>
    %69 = arith.mulf %68, %67 : vector<8x4xf32>
    %70 = arith.subf %48, %69 : vector<8x4xf32>
    %cst_34 = arith.constant dense<0.000000e+00> : vector<8xf32>
    %71 = vector.multi_reduction <add>, %70, %cst_34 [1] : vector<8x4xf32> to vector<8xf32>
    %72 = vector.shape_cast %71 : vector<8xf32> to vector<8x1xf32>
    %c0_35 = arith.constant 0 : index
    %c8 = arith.constant 8 : index
    %73 = vector.load %arg3[%c0_35, %c8] : memref<8x128xf32, #tpu.memory_space<vmem>>, vector<8x1xf32>
    tpu.vector_store %arg3[%c0_35, %c8], %72 {strides = array<i32>} : memref<8x128xf32, #tpu.memory_space<vmem>>, vector<8x1xf32>,
    return
  }
}

</mosaic_0001>

<bundles_post_ra>
// kernel: tpu_custom_call.1
= control target key start
LH: loop header
LB: loop body
LE: loop exit
PB: predicated region body
PF: predicated region fallthrough
CT: control target
= control target key end

     0   :  { %vm36_vm0 = vcmask 130048   ;;  %s339_s0 = inlined_call_operand.vmem [shape: f32[8,16], index: 0, kind: input, shape index: {}]   ;;  %s340_s1 = inlined_call_operand.vmem [shape: f32[144,32], index: 1, kind: input, shape index: {}]   ;;  %s341_s2 = inlined_call_operand.vmem [shape: f32[8,4], index: 2, kind: input, shape index: {}]   ;;  %s342_s3 = inlined_call_operand.hbm [shape: f32[8,128], index: 3, kind: output, shape index: {}]  }
   0x1   :  { %v18_v0 = vld [vmem:[%s340_s1 + $0x8] sm:$0xff]  ;;  %v17_v1 = vld [vmem:[%s340_s1] sm:$0xff] }
   0x2   :  { %54 = vmatpush.msra.mxu0 %v18_v0  ;;  %v15_v2 = vld [vmem:[%s339_s0] sm:$0xff]  ;;  %v23_v3 = vld [vmem:[%s340_s1 + $0x28] sm:$0xff] }
   0x3   :  { %78 = vmatpush.msra.mxu1 %v23_v3 }
   0x4   :  { %55 = vmatpush.msra.mxu0 %v17_v1 }
   0x5   :  { %8 = vsyncpa [#allocation3], 0  ;;  %200 = vmatmul.msk.f32.vlgmr.msra.gmra.mxu0 %vm36_vm0, %v15_v2  ;;  %v22_v4 = vld [vmem:[%s340_s1 + $0x20] sm:$0xff]  ;;  %v21_v5 = vld [vmem:[%s340_s1 + $0x18] sm:$0xff]  ;;  %vm62_vm1 = vcmask 261120   ;;  %v248_v23 = vmov 0.0  }
   0x6   :  { %79 = vmatpush.msra.mxu1 %v22_v4  ;;  %v20_v6 = vld [vmem:[%s340_s1 + $0x10] sm:$0xff]  ;;  %v28_v7 = vld [vmem:[%s340_s1 + $0x48] sm:$0xff]  ;;  %v27_v13 = vld [vmem:[%s340_s1 + $0x40] sm:$0xff]  ;;  %142 = vst [vmem:[#allocation2] sm:$0xff] %v248_v23  ;;  %s249_s22 = smov 4   ;;  %vm143_vm2 = vcmask 31744  }
   0x7   :  { %v33_v8 = vld [vmem:[%s340_s1 + $0x68] sm:$0xff]  ;;  %103 = vmatpush.msra.mxu2 %v28_v7  ;;  %v208_v9 = vld [vmem:[%s340_s1 + $0x70] ss:$0 sm:$0xff]  ;;  %v32_v14 = vld [vmem:[%s340_s1 + $0x60] sm:$0xff]  ;;  %vm149_vm5 = vcmask 64544   ;;  %s191_s26 = sshll.u32 %s342_s3, 4  ;;  %s192_s26 = int_to_ptr.hbm [resolvable:$true] %s191_s26 }
   0x8   :  { %80 = vmatpush.msra.mxu1 %v21_v5  ;;  %124 = vmatpush.msra.mxu3 %v33_v8  ;;  %v26_v15 = vld [vmem:[%s340_s1 + $0x38] sm:$0xff]  ;;  %v25_v17 = vld [vmem:[%s340_s1 + $0x30] sm:$0xff]  ;;  %v210_v24 = vld [vmem:[%s340_s1 + $0x80] ss:$0 sm:$0xff]  ;;  %vm182_vm6 = vcmask 72768  }
   0x9   :  { %104 = vmatpush.msra.mxu2 %v27_v13  ;;  %v31_v16 = vld [vmem:[%s340_s1 + $0x58] sm:$0xff]  ;;  %v30_v18 = vld [vmem:[%s340_s1 + $0x50] sm:$0xff]  ;;  %v211_v25 = vld [vmem:[%s340_s1 + $0x88] ss:$0 sm:$0xff] }
   0xa   :  { %81 = vmatpush.msra.mxu1 %v20_v6  ;;  %125 = vmatpush.msra.mxu3 %v32_v14  ;;  %v209_v19 = vld [vmem:[%s340_s1 + $0x78] ss:$0 sm:$0xff]  ;;  %v16_v36 = vld [vmem:[%s341_s2] sm:$0xff]  ;;  %s250_s1 = smov [#allocation2]  }
   0xb   :  { %105 = vmatpush.msra.mxu2 %v26_v15  ;;  %v151_v49 = vmul.f32 %v16_v36, %v16_v36  ;;  %s189_s2 = sshll.u32 %s250_s1, 4  ;;  %s190_s2 = int_to_ptr.vmem [resolvable:$true] %s189_s2 }
   0xc   :  { %126 = vmatpush.msra.mxu3 %v31_v16 }
   0xd   :  { %106 = vmatpush.msra.mxu2 %v25_v17  ;;  %v152_v53 = vmul.f32 -0.5, %v151_v49 }
   0xe   :  { %127 = vmatpush.msra.mxu3 %v30_v18 }
  0x82   :  { %v57_v10 = vpop.f32.mrf.mxu0 }
  0x83   :  { %v58_v11 = vadd.f32 %v208_v9, %v57_v10 }
  0x85   :  { %v60_v12 = vmax.f32 %v58_v11, 0.0 }
  0x87   :  { %201 = vmatmul.msk.f32.vlgmr.msra.gmra.mxu1 %vm62_vm1, %v60_v12 }
 0x104   :  { %v83_v20 = vpop.f32.mrf.mxu1 }
 0x105   :  { %v84_v21 = vadd.f32 %v209_v19, %v83_v20 }
 0x107   :  { %v86_v22 = vmax.f32 %v84_v21, 0.0 }
 0x109   :  { %202 = vmatmul.msk.f32.vlgmr.msra.gmra.mxu2 %vm62_vm1, %v86_v22  ;;  %203 = vmatmul.msk.f32.vlgmr.msra.gmra.mxu3 %vm62_vm1, %v86_v22 }
 0x18c   :  { %v108_v26 = vpop.f32.mrf.mxu2  ;;  %v129_v27 = vpop.f32.mrf.mxu3 }
 0x18d   :  { %v109_v28 = vadd.f32 %v210_v24, %v108_v26  ;;  %v130_v29 = vadd.f32 %v211_v25, %v129_v27 }
 0x18f   :  { %212 = vtanh.f32 %v109_v28  ;;  %v132_v30 = vmax.f32 %v130_v29, -20.0 }
 0x191   :  { %v133_v31 = vmin.f32 %v132_v30, 2.0 }
 0x193   :  { %v134_v32 = vmul.f32 1.442695, %v133_v31  ;;  %v153_v59 = vsub.f32 %v152_v53, %v133_v31 }
 0x195   :  { %v213_v33 = vpop.eup %212  ;;  %214 = vpow2.f32 %v134_v32  ;;  %v204_v63 = vadd.f32 -0.9189385, %v153_v59 }
 0x196   :  { %v141_v34 = vmul.f32 2.0, %v213_v33 }
 0x198   :  { %146 = vrot.lane.b32.xlu0 %v141_v34, %s249_s22 }
 0x19b   :  { %v215_v35 = vpop.eup %214 }
 0x19c   :  { %v136_v37 = vmul.f32 %v215_v35, %v16_v36 }
 0x19e   :  { %v137_v38 = vadd.f32 %v136_v37, %v109_v28 }
 0x1a0   :  { %v156_v39 = vmul.f32 -2.0, %v137_v38  ;;  %216 = vtanh.f32 %v137_v38  ;;  %v155_v60 = vsub.f32 0.6931472, %v137_v38 }
 0x1a2   :  { %v158_v40 = vsub.f32 0.0, %v156_v39  ;;  %v157_v56 = vmax.f32 %v156_v39, 0.0 }
 0x1a4   :  { %v161_v41 = vand.u32 2147483647, %v158_v40  ;;  %vm159_vm4 = vcmp.ne.f32.partialorder %v158_v40, %v158_v40 }
 0x1a6   :  { %v217_v42 = vpop.eup %216  ;;  %v162_v43 = vsub.f32 0.0, %v161_v41 }
 0x1a7   :  { %v139_v44 = vmul.f32 2.0, %v217_v42 }
 0x1a8   :  { %v163_v45 = vmul.f32 1.442695, %v162_v43 }
 0x1a9   :  { %144 = vst.msk [vmem:[#allocation2] sm:$0xff] %vm143_vm2, %v139_v44 }
 0x1aa   :  { %218 = vpow2.f32 %v163_v45 }
 0x1b0   :  { %v219_v46 = vpop.eup %218 }
 0x1b1   :  { %v165_v47 = vadd.f32 1.0, %v219_v46  ;;  %v168_v48 = vmul.f32 -0.5, %v219_v46  ;;  %v171_v51 = vand.u32 2147483647, %v219_v46 }
 0x1b3   :  { %220 = vlog2.f32 %v165_v47  ;;  %v169_v50 = vadd.f32 1.0, %v168_v48  ;;  %vm172_vm3 = vcmp.lt.f32.partialorder %v171_v51, 0.0004427343 }
 0x1b5   :  { %v170_v55 = vmul.f32 %v219_v46, %v169_v50 }
 0x1b9   :  { %v221_v52 = vpop.eup %220 }
 0x1ba   :  { %v167_v54 = vmul.f32 0.6931472, %v221_v52 }
 0x1bc   :  { %v173_v57 = vsel %vm172_vm3, %v170_v55, %v167_v54 }
 0x1bd   :  { %v174_v58 = vadd.f32 %v173_v57, %v157_v56 }
 0x1bf   :  { %v175_v61 = vsel %vm159_vm4, %v156_v39, %v174_v58 }
 0x1c0   :  { %v176_v62 = vsub.f32 %v155_v60, %v175_v61 }
 0x1c2   :  { %v177_v0 = vmul.f32 2.0, %v176_v62 }
 0x1c4   :  { %v178_v1 = vsub.f32 %v204_v63, %v177_v0 }
 0x1c6   :  { %v179_v2 = vsel %vm143_vm2, %v178_v1, 0.0 }
 0x1c7   :  { %180 = vadd.xlane.f32.xlu0 %v179_v2 }
 0x20a   :  { %v147_v3 = vpop.permute.xlu0 %146 }
 0x20b   :  { %150 = vst.msk [vmem:[#allocation2] sm:$0xff] %vm149_vm5, %v147_v3 }
 0x23a   :  { %v181_v4 = vpop.xlane.xlu0 %180 }
 0x23b   :  { %183 = vst.msk [vmem:[#allocation2] sm:$0xff] %vm182_vm6, %v181_v4 }
 0x23c   :  { %194 = dma.vmem_to_hbm [thread:$0]  %s190_s2, 128, %s192_s26, [#allocation3]  }
 0x23d   :  { %246 = dma.done.wait [#allocation3], 128  }
 0x23e   :  { %247 = vsyncadd [#allocation3], 4294967168 }
 0x23f   :  { %199 = vsyncpa [#allocation3], 1 }

</bundles_post_ra>
